<compile_context>
chip_gen: v5e
topology: v5e:2x2
jax: 0.10.0
libtpu: 0.0.40
codegen_flags: <defaults>
</compile_context>

<pallas_src>
import functools

import jax
import jax.numpy as jnp
import numpy as np
from jax.experimental import pallas as pl
from jax.experimental.pallas import tpu as pltpu

_BN_EPS = 1e-5
_ORDER = 3
_MLP_LAYERS = 3


# ---------------------------------------------------------------------------
# Fused forward kernel: seq_encoder -> 3x(GIN agg, MLP, BN, readout) -> classifier
# ---------------------------------------------------------------------------
def _dapp_fused_kernel(adj_ref, x_ref, sw_ref, sb_ref, lw_ref, lb_ref,
                       gamma_ref, beta_ref, rmat_ref, cw_ref, cb_ref,
                       o_ref, *, order, mlp_layers, eps):
    adj = adj_ref[...]                                              # (N, N)
    rmat = rmat_ref[...]                                            # (bs, N)
    n = adj.shape[0]
    inv_n = jnp.float32(1.0 / n)
    ones_row = jnp.ones((1, n), jnp.float32)                        # BN column sums via MXU

    # seq_encoder: Linear(1, rank)  ==  broadcast multiply + bias.
    feats = x_ref[...] * sw_ref[...] + sb_ref[...]                  # (N, rank)

    # Classifier accumulator, initialized with the bias.
    acc = jnp.broadcast_to(cb_ref[...], o_ref.shape).astype(jnp.float32)

    for i in range(order):
        # GINConv('sum', eps=0): apply_func((1+eps)*x + sum_{j in N(v)} x_j)
        x = feats + jnp.dot(adj, feats, preferred_element_type=jnp.float32)
        # DApp_MLP: mlp_layers x (Linear + ReLU)  — MXU path.
        for j in range(mlp_layers):
            x = jnp.dot(x, lw_ref[i, j], preferred_element_type=jnp.float32) + lb_ref[i, j]
            x = jnp.maximum(x, 0.0)
        # BatchNorm1d (training-mode batch stats, biased variance), single pass:
        # column sums on the MXU, var = E[x^2] - mean^2 (post-ReLU => well-conditioned).
        s1 = jnp.dot(ones_row, x, preferred_element_type=jnp.float32)       # (1, rank)
        s2 = jnp.dot(ones_row, x * x, preferred_element_type=jnp.float32)   # (1, rank)
        mean = s1 * inv_n
        var = s2 * inv_n - mean * mean
        x = (x - mean) * jax.lax.rsqrt(var + eps) * gamma_ref[i] + beta_ref[i]
        feats = x                                                   # Dropout(p=0.0) == identity
        # Per-graph readout (node sum) + this order's slice of the classifier.
        readout = jnp.dot(rmat, feats, preferred_element_type=jnp.float32)  # (bs, rank)
        acc = acc + jnp.dot(readout, cw_ref[i], preferred_element_type=jnp.float32)

    o_ref[...] = acc.astype(o_ref.dtype)


def make_readout_matrix(bs, max_flow_length):
    """Per-graph node-sum membership matrix; build ONCE (static shapes only)."""
    return jnp.asarray(np.repeat(np.eye(bs, dtype=np.float32), max_flow_length, axis=1))


def dapp_forward(params, flow_feature, adj, node_feats, rmat, *,
                 bs, max_flow_length, rank, num_classes):
    """node_feats must already be (N, 1) float32; rmat is the precomputed (bs, N) matrix."""
    del flow_feature  # config.stat == False -> unused, same as reference forward
    N = bs * max_flow_length

    operands = (
        adj,                                   # (N, N)
        node_feats,                            # (N, 1)
        params["seq_w"], params["seq_b"],
        params["lin_w"], params["lin_b"],
        params["gamma"], params["beta"],
        rmat,                                  # (bs, N)
        params["cls_w"], params["cls_b"],
    )

    # Advisory cost for XLA's scheduler (the call is tiny; don't fence around it).
    flops = 2 * N * rank + _ORDER * (
        2 * N * N * rank                       # GIN aggregation matmul
        + _MLP_LAYERS * 2 * N * rank * rank    # MLP linears
        + 2 * 2 * N * rank                     # BN column sums
        + 2 * bs * N * rank                    # readout
        + 2 * bs * rank * num_classes)         # classifier slice
    bytes_accessed = sum(int(np.prod(a.shape)) * a.dtype.itemsize for a in operands)
    bytes_accessed += bs * num_classes * 4

    vmem_spec = pl.BlockSpec(memory_space=pltpu.MemorySpace.VMEM)
    kernel = functools.partial(
        _dapp_fused_kernel, order=_ORDER, mlp_layers=_MLP_LAYERS, eps=_BN_EPS)
    return pl.pallas_call(
        kernel,
        out_shape=jax.ShapeDtypeStruct((bs, num_classes), jnp.float32),
        in_specs=[vmem_spec] * len(operands),
        out_specs=vmem_spec,
        cost_estimate=pl.CostEstimate(
            flops=int(flops),
            transcendentals=int(_ORDER * rank),
            bytes_accessed=int(bytes_accessed)),
    )(*operands)


# ---------------------------------------------------------------------------
# Parameter init (deterministic, synthetic — PyTorch-style uniform bounds),
# stored in the stacked layout the fused kernel consumes.
# ---------------------------------------------------------------------------
def _uniform(key, shape, bound):
    return jax.random.uniform(key, shape, jnp.float32, -bound, bound)


def init_params(key, rank, order, num_classes, mlp_layers=_MLP_LAYERS):
    n_keys = 2 + 2 * order * mlp_layers + 2
    keys = iter(jax.random.split(key, n_keys))

    seq_w = _uniform(next(keys), (1, rank), 1.0)             # fan_in = 1
    seq_b = _uniform(next(keys), (1, rank), 1.0)

    bound = 1.0 / np.sqrt(rank)
    lin_w = jnp.stack([
        jnp.stack([_uniform(next(keys), (rank, rank), bound) for _ in range(mlp_layers)])
        for _ in range(order)])                              # (order, layers, rank, rank)
    lin_b = jnp.stack([
        jnp.stack([_uniform(next(keys), (1, rank), bound) for _ in range(mlp_layers)])
        for _ in range(order)])                              # (order, layers, 1, rank)

    gamma = jnp.ones((order, 1, rank), jnp.float32)
    beta = jnp.zeros((order, 1, rank), jnp.float32)

    cbound = 1.0 / np.sqrt(rank * order)
    cls_w = _uniform(next(keys), (order, rank, num_classes), cbound)  # stacked slices of (rank*order, nc)
    cls_b = _uniform(next(keys), (1, num_classes), cbound)

    return dict(seq_w=seq_w, seq_b=seq_b, lin_w=lin_w, lin_b=lin_b,
                gamma=gamma, beta=beta, cls_w=cls_w, cls_b=cls_b)


# ---------------------------------------------------------------------------
# Pure-JAX reference (mirrors the original PyTorch forward) for verification.
# ---------------------------------------------------------------------------
def dapp_reference(params, adj, node_feats, *, bs, max_flow_length, rank):
    feats = node_feats @ params["seq_w"] + params["seq_b"]
    readouts = []
    for i in range(_ORDER):
        x = feats + adj @ feats
        for j in range(_MLP_LAYERS):
            x = jnp.maximum(x @ params["lin_w"][i, j] + params["lin_b"][i, j], 0.0)
        mean = jnp.mean(x, axis=0, keepdims=True)
        var = jnp.mean((x - mean) ** 2, axis=0, keepdims=True)
        x = (x - mean) / jnp.sqrt(var + _BN_EPS) * params["gamma"][i] + params["beta"][i]
        feats = x
        readouts.append(jnp.sum(feats.reshape(bs, max_flow_length, rank), axis=1))
    all_r = jnp.concatenate(readouts, axis=-1)                       # (bs, rank*order)
    w_full = params["cls_w"].reshape(_ORDER * rank, -1)              # concat order matches
    return all_r @ w_full + params["cls_b"]


# ---------------------------------------------------------------------------
# Driver
# ---------------------------------------------------------------------------
if __name__ == "__main__":
    rank = 32
    max_flow_length = 16
    bs = 2
    num_classes = 8
    N = bs * max_flow_length

    key = jax.random.PRNGKey(0)
    k_params, k_feats, k_flow = jax.random.split(key, 3)

    params = init_params(k_params, rank, _ORDER, num_classes)

    # Node features (graph.ndata['feats'], pre-shaped (N,1) f32) and (unused) flow stats.
    node_feats = jax.random.normal(k_feats, (N, 1), jnp.float32)
    flow_feature = jax.random.normal(k_flow, (bs, 39), jnp.float32)

    # Deterministic graph: per-flow bidirectional chain, block-diagonal adj.
    A = np.zeros((N, N), np.float32)
    for g in range(bs):
        base = g * max_flow_length
        for i in range(max_flow_length - 1):
            A[base + i, base + i + 1] = 1.0
            A[base + i + 1, base + i] = 1.0
    adj = jnp.asarray(A)

    # Built once per (bs, max_flow_length); reused across calls.
    rmat = make_readout_matrix(bs, max_flow_length)

    y = dapp_forward(
        params, flow_feature, adj, node_feats, rmat,
        bs=bs, max_flow_length=max_flow_length, rank=rank, num_classes=num_classes,
    )
    y = jax.block_until_ready(y)

    y_ref = dapp_reference(
        params, adj, node_feats,
        bs=bs, max_flow_length=max_flow_length, rank=rank,
    )
    np.testing.assert_allclose(np.asarray(y), np.asarray(y_ref), rtol=1e-3, atol=1e-3)
    assert y.shape == (bs, num_classes)

    print("KERNEL_OK")
</pallas_src>

<mosaic_0001>
module attributes {stable_mosaic.version = 11 : i64} {
  func.func @_dapp_fused_kernel(%arg0: memref<32x32xf32, #tpu.memory_space<vmem>>, %arg1: memref<32x1xf32, #tpu.memory_space<vmem>>, %arg2: memref<1x32xf32, #tpu.memory_space<vmem>>, %arg3: memref<1x32xf32, #tpu.memory_space<vmem>>, %arg4: memref<3x3x32x32xf32, #tpu.memory_space<vmem>>, %arg5: memref<3x3x1x32xf32, #tpu.memory_space<vmem>>, %arg6: memref<3x1x32xf32, #tpu.memory_space<vmem>>, %arg7: memref<3x1x32xf32, #tpu.memory_space<vmem>>, %arg8: memref<2x32xf32, #tpu.memory_space<vmem>>, %arg9: memref<3x32x8xf32, #tpu.memory_space<vmem>>, %arg10: memref<1x8xf32, #tpu.memory_space<vmem>>, %arg11: memref<2x8xf32, #tpu.memory_space<vmem>>) attributes {dimension_semantics = [], scalar_prefetch = 0 : i64, scratch_operands = 0 : i64, tpu.core_type = #tpu.core_type<tc>} {
    %c0 = arith.constant 0 : index
    %c0_0 = arith.constant 0 : index
    %0 = vector.load %arg0[%c0, %c0_0] : memref<32x32xf32, #tpu.memory_space<vmem>>, vector<32x32xf32>
    %c0_1 = arith.constant 0 : index
    %c0_2 = arith.constant 0 : index
    %1 = vector.load %arg8[%c0_1, %c0_2] : memref<2x32xf32, #tpu.memory_space<vmem>>, vector<2x32xf32>
    %cst = arith.constant 1.000000e+00 : f32
    %2 = vector.broadcast %cst : f32 to vector<1x32xf32>
    %c0_3 = arith.constant 0 : index
    %c0_4 = arith.constant 0 : index
    %3 = vector.load %arg1[%c0_3, %c0_4] : memref<32x1xf32, #tpu.memory_space<vmem>>, vector<32x1xf32>
    %c0_5 = arith.constant 0 : index
    %c0_6 = arith.constant 0 : index
    %4 = vector.load %arg2[%c0_5, %c0_6] : memref<1x32xf32, #tpu.memory_space<vmem>>, vector<1x32xf32>
    %5 = vector.broadcast %3 : vector<32x1xf32> to vector<32x32xf32>
    %6 = vector.broadcast %4 : vector<1x32xf32> to vector<32x32xf32>
    %7 = arith.mulf %5, %6 : vector<32x32xf32>
    %c0_7 = arith.constant 0 : index
    %c0_8 = arith.constant 0 : index
    %8 = vector.load %arg3[%c0_7, %c0_8] : memref<1x32xf32, #tpu.memory_space<vmem>>, vector<1x32xf32>
    %9 = vector.broadcast %8 : vector<1x32xf32> to vector<32x32xf32>
    %10 = arith.addf %7, %9 : vector<32x32xf32>
    %c0_9 = arith.constant 0 : index
    %c0_10 = arith.constant 0 : index
    %11 = vector.load %arg10[%c0_9, %c0_10] : memref<1x8xf32, #tpu.memory_space<vmem>>, vector<1x8xf32>
    %12 = vector.shape_cast %11 : vector<1x8xf32> to vector<1x8xf32>
    %13 = vector.broadcast %12 : vector<1x8xf32> to vector<2x8xf32>
    %cst_11 = arith.constant dense<0.000000e+00> : vector<32x32xf32>
    %14 = tpu.matmul %0, %10, %cst_11 {dimension_numbers = #tpu.dot_dimension_numbers<[1], [0], [0], [1], [0, 0, 1, 1], [], []>} : vector<32x32xf32>, vector<32x32xf32>, vector<32x32xf32> -> vector<32x32xf32>
    %15 = arith.addf %10, %14 : vector<32x32xf32>
    %c0_12 = arith.constant 0 : index
    %c0_13 = arith.constant 0 : index
    %c0_14 = arith.constant 0 : index
    %c0_15 = arith.constant 0 : index
    %16 = vector.load %arg4[%c0_12, %c0_13, %c0_14, %c0_15] : memref<3x3x32x32xf32, #tpu.memory_space<vmem>>, vector<1x1x32x32xf32>
    %17 = vector.shape_cast %16 : vector<1x1x32x32xf32> to vector<32x32xf32>
    %cst_16 = arith.constant dense<0.000000e+00> : vector<32x32xf32>
    %18 = tpu.matmul %15, %17, %cst_16 {dimension_numbers = #tpu.dot_dimension_numbers<[1], [0], [0], [1], [0, 0, 1, 1], [], []>} : vector<32x32xf32>, vector<32x32xf32>, vector<32x32xf32> -> vector<32x32xf32>
    %c0_17 = arith.constant 0 : index
    %c0_18 = arith.constant 0 : index
    %c0_19 = arith.constant 0 : index
    %c0_20 = arith.constant 0 : index
    %19 = vector.load %arg5[%c0_17, %c0_18, %c0_19, %c0_20] : memref<3x3x1x32xf32, #tpu.memory_space<vmem>>, vector<1x1x1x32xf32>
    %20 = vector.shape_cast %19 : vector<1x1x1x32xf32> to vector<1x32xf32>
    %21 = vector.broadcast %20 : vector<1x32xf32> to vector<32x32xf32>
    %22 = arith.addf %18, %21 : vector<32x32xf32>
    %cst_21 = arith.constant 0.000000e+00 : f32
    %23 = vector.broadcast %cst_21 : f32 to vector<32x32xf32>
    %24 = arith.maximumf %22, %23 : vector<32x32xf32>
    %c0_22 = arith.constant 0 : index
    %c1 = arith.constant 1 : index
    %c0_23 = arith.constant 0 : index
    %c0_24 = arith.constant 0 : index
    %25 = vector.load %arg4[%c0_22, %c1, %c0_23, %c0_24] : memref<3x3x32x32xf32, #tpu.memory_space<vmem>>, vector<1x1x32x32xf32>
    %26 = vector.shape_cast %25 : vector<1x1x32x32xf32> to vector<32x32xf32>
    %cst_25 = arith.constant dense<0.000000e+00> : vector<32x32xf32>
    %27 = tpu.matmul %24, %26, %cst_25 {dimension_numbers = #tpu.dot_dimension_numbers<[1], [0], [0], [1], [0, 0, 1, 1], [], []>} : vector<32x32xf32>, vector<32x32xf32>, vector<32x32xf32> -> vector<32x32xf32>
    %c0_26 = arith.constant 0 : index
    %c1_27 = arith.constant 1 : index
    %c0_28 = arith.constant 0 : index
    %c0_29 = arith.constant 0 : index
    %28 = vector.load %arg5[%c0_26, %c1_27, %c0_28, %c0_29] : memref<3x3x1x32xf32, #tpu.memory_space<vmem>>, vector<1x1x1x32xf32>
    %29 = vector.shape_cast %28 : vector<1x1x1x32xf32> to vector<1x32xf32>
    %30 = vector.broadcast %29 : vector<1x32xf32> to vector<32x32xf32>
    %31 = arith.addf %27, %30 : vector<32x32xf32>
    %cst_30 = arith.constant 0.000000e+00 : f32
    %32 = vector.broadcast %cst_30 : f32 to vector<32x32xf32>
    %33 = arith.maximumf %31, %32 : vector<32x32xf32>
    %c0_31 = arith.constant 0 : index
    %c2 = arith.constant 2 : index
    %c0_32 = arith.constant 0 : index
    %c0_33 = arith.constant 0 : index
    %34 = vector.load %arg4[%c0_31, %c2, %c0_32, %c0_33] : memref<3x3x32x32xf32, #tpu.memory_space<vmem>>, vector<1x1x32x32xf32>
    %35 = vector.shape_cast %34 : vector<1x1x32x32xf32> to vector<32x32xf32>
    %cst_34 = arith.constant dense<0.000000e+00> : vector<32x32xf32>
    %36 = tpu.matmul %33, %35, %cst_34 {dimension_numbers = #tpu.dot_dimension_numbers<[1], [0], [0], [1], [0, 0, 1, 1], [], []>} : vector<32x32xf32>, vector<32x32xf32>, vector<32x32xf32> -> vector<32x32xf32>
    %c0_35 = arith.constant 0 : index
    %c2_36 = arith.constant 2 : index
    %c0_37 = arith.constant 0 : index
    %c0_38 = arith.constant 0 : index
    %37 = vector.load %arg5[%c0_35, %c2_36, %c0_37, %c0_38] : memref<3x3x1x32xf32, #tpu.memory_space<vmem>>, vector<1x1x1x32xf32>
    %38 = vector.shape_cast %37 : vector<1x1x1x32xf32> to vector<1x32xf32>
    %39 = vector.broadcast %38 : vector<1x32xf32> to vector<32x32xf32>
    %40 = arith.addf %36, %39 : vector<32x32xf32>
    %cst_39 = arith.constant 0.000000e+00 : f32
    %41 = vector.broadcast %cst_39 : f32 to vector<32x32xf32>
    %42 = arith.maximumf %40, %41 : vector<32x32xf32>
    %cst_40 = arith.constant dense<0.000000e+00> : vector<1x32xf32>
    %43 = tpu.matmul %2, %42, %cst_40 {dimension_numbers = #tpu.dot_dimension_numbers<[1], [0], [0], [1], [0, 0, 1, 1], [], []>} : vector<1x32xf32>, vector<32x32xf32>, vector<1x32xf32> -> vector<1x32xf32>
    %44 = arith.mulf %42, %42 : vector<32x32xf32>
    %cst_41 = arith.constant dense<0.000000e+00> : vector<1x32xf32>
    %45 = tpu.matmul %2, %44, %cst_41 {dimension_numbers = #tpu.dot_dimension_numbers<[1], [0], [0], [1], [0, 0, 1, 1], [], []>} : vector<1x32xf32>, vector<32x32xf32>, vector<1x32xf32> -> vector<1x32xf32>
    %cst_42 = arith.constant 3.125000e-02 : f32
    %46 = vector.broadcast %cst_42 : f32 to vector<1x32xf32>
    %47 = arith.mulf %43, %46 : vector<1x32xf32>
    %cst_43 = arith.constant 3.125000e-02 : f32
    %48 = vector.broadcast %cst_43 : f32 to vector<1x32xf32>
    %49 = arith.mulf %45, %48 : vector<1x32xf32>
    %50 = arith.mulf %47, %47 : vector<1x32xf32>
    %51 = arith.subf %49, %50 : vector<1x32xf32>
    %52 = vector.broadcast %47 : vector<1x32xf32> to vector<32x32xf32>
    %53 = arith.subf %42, %52 : vector<32x32xf32>
    %cst_44 = arith.constant 9.99999974E-6 : f32
    %54 = vector.broadcast %cst_44 : f32 to vector<1x32xf32>
    %55 = arith.addf %51, %54 : vector<1x32xf32>
    %56 = math.rsqrt %55 : vector<1x32xf32>
    %57 = vector.broadcast %56 : vector<1x32xf32> to vector<32x32xf32>
    %58 = arith.mulf %53, %57 : vector<32x32xf32>
    %c0_45 = arith.constant 0 : index
    %c0_46 = arith.constant 0 : index
    %c0_47 = arith.constant 0 : index
    %59 = vector.load %arg6[%c0_45, %c0_46, %c0_47] : memref<3x1x32xf32, #tpu.memory_space<vmem>>, vector<1x1x32xf32>
    %60 = vector.shape_cast %59 : vector<1x1x32xf32> to vector<1x32xf32>
    %61 = vector.broadcast %60 : vector<1x32xf32> to vector<32x32xf32>
    %62 = arith.mulf %58, %61 : vector<32x32xf32>
    %c0_48 = arith.constant 0 : index
    %c0_49 = arith.constant 0 : index
    %c0_50 = arith.constant 0 : index
    %63 = vector.load %arg7[%c0_48, %c0_49, %c0_50] : memref<3x1x32xf32, #tpu.memory_space<vmem>>, vector<1x1x32xf32>
    %64 = vector.shape_cast %63 : vector<1x1x32xf32> to vector<1x32xf32>
    %65 = vector.broadcast %64 : vector<1x32xf32> to vector<32x32xf32>
    %66 = arith.addf %62, %65 : vector<32x32xf32>
    %cst_51 = arith.constant dense<0.000000e+00> : vector<2x32xf32>
    %67 = tpu.matmul %1, %66, %cst_51 {dimension_numbers = #tpu.dot_dimension_numbers<[1], [0], [0], [1], [0, 0, 1, 1], [], []>} : vector<2x32xf32>, vector<32x32xf32>, vector<2x32xf32> -> vector<2x32xf32>
    %c0_52 = arith.constant 0 : index
    %c0_53 = arith.constant 0 : index
    %c0_54 = arith.constant 0 : index
    %68 = vector.load %arg9[%c0_52, %c0_53, %c0_54] : memref<3x32x8xf32, #tpu.memory_space<vmem>>, vector<1x32x8xf32>
    %69 = vector.shape_cast %68 : vector<1x32x8xf32> to vector<32x8xf32>
    %cst_55 = arith.constant dense<0.000000e+00> : vector<2x8xf32>
    %70 = tpu.matmul %67, %69, %cst_55 {dimension_numbers = #tpu.dot_dimension_numbers<[1], [0], [0], [1], [0, 0, 1, 1], [], []>} : vector<2x32xf32>, vector<32x8xf32>, vector<2x8xf32> -> vector<2x8xf32>
    %71 = arith.addf %13, %70 : vector<2x8xf32>
    %cst_56 = arith.constant dense<0.000000e+00> : vector<32x32xf32>
    %72 = tpu.matmul %0, %66, %cst_56 {dimension_numbers = #tpu.dot_dimension_numbers<[1], [0], [0], [1], [0, 0, 1, 1], [], []>} : vector<32x32xf32>, vector<32x32xf32>, vector<32x32xf32> -> vector<32x32xf32>
    %73 = arith.addf %66, %72 : vector<32x32xf32>
    %c1_57 = arith.constant 1 : index
    %c0_58 = arith.constant 0 : index
    %c0_59 = arith.constant 0 : index
    %c0_60 = arith.constant 0 : index
    %74 = vector.load %arg4[%c1_57, %c0_58, %c0_59, %c0_60] : memref<3x3x32x32xf32, #tpu.memory_space<vmem>>, vector<1x1x32x32xf32>
    %75 = vector.shape_cast %74 : vector<1x1x32x32xf32> to vector<32x32xf32>
    %cst_61 = arith.constant dense<0.000000e+00> : vector<32x32xf32>
    %76 = tpu.matmul %73, %75, %cst_61 {dimension_numbers = #tpu.dot_dimension_numbers<[1], [0], [0], [1], [0, 0, 1, 1], [], []>} : vector<32x32xf32>, vector<32x32xf32>, vector<32x32xf32> -> vector<32x32xf32>
    %c1_62 = arith.constant 1 : index
    %c0_63 = arith.constant 0 : index
    %c0_64 = arith.constant 0 : index
    %c0_65 = arith.constant 0 : index
    %77 = vector.load %arg5[%c1_62, %c0_63, %c0_64, %c0_65] : memref<3x3x1x32xf32, #tpu.memory_space<vmem>>, vector<1x1x1x32xf32>
    %78 = vector.shape_cast %77 : vector<1x1x1x32xf32> to vector<1x32xf32>
    %79 = vector.broadcast %78 : vector<1x32xf32> to vector<32x32xf32>
    %80 = arith.addf %76, %79 : vector<32x32xf32>
    %cst_66 = arith.constant 0.000000e+00 : f32
    %81 = vector.broadcast %cst_66 : f32 to vector<32x32xf32>
    %82 = arith.maximumf %80, %81 : vector<32x32xf32>
    %c1_67 = arith.constant 1 : index
    %c1_68 = arith.constant 1 : index
    %c0_69 = arith.constant 0 : index
    %c0_70 = arith.constant 0 : index
    %83 = vector.load %arg4[%c1_67, %c1_68, %c0_69, %c0_70] : memref<3x3x32x32xf32, #tpu.memory_space<vmem>>, vector<1x1x32x32xf32>
    %84 = vector.shape_cast %83 : vector<1x1x32x32xf32> to vector<32x32xf32>
    %cst_71 = arith.constant dense<0.000000e+00> : vector<32x32xf32>
    %85 = tpu.matmul %82, %84, %cst_71 {dimension_numbers = #tpu.dot_dimension_numbers<[1], [0], [0], [1], [0, 0, 1, 1], [], []>} : vector<32x32xf32>, vector<32x32xf32>, vector<32x32xf32> -> vector<32x32xf32>
    %c1_72 = arith.constant 1 : index
    %c1_73 = arith.constant 1 : index
    %c0_74 = arith.constant 0 : index
    %c0_75 = arith.constant 0 : index
    %86 = vector.load %arg5[%c1_72, %c1_73, %c0_74, %c0_75] : memref<3x3x1x32xf32, #tpu.memory_space<vmem>>, vector<1x1x1x32xf32>
    %87 = vector.shape_cast %86 : vector<1x1x1x32xf32> to vector<1x32xf32>
    %88 = vector.broadcast %87 : vector<1x32xf32> to vector<32x32xf32>
    %89 = arith.addf %85, %88 : vector<32x32xf32>
    %cst_76 = arith.constant 0.000000e+00 : f32
    %90 = vector.broadcast %cst_76 : f32 to vector<32x32xf32>
    %91 = arith.maximumf %89, %90 : vector<32x32xf32>
    %c1_77 = arith.constant 1 : index
    %c2_78 = arith.constant 2 : index
    %c0_79 = arith.constant 0 : index
    %c0_80 = arith.constant 0 : index
    %92 = vector.load %arg4[%c1_77, %c2_78, %c0_79, %c0_80] : memref<3x3x32x32xf32, #tpu.memory_space<vmem>>, vector<1x1x32x32xf32>
    %93 = vector.shape_cast %92 : vector<1x1x32x32xf32> to vector<32x32xf32>
    %cst_81 = arith.constant dense<0.000000e+00> : vector<32x32xf32>
    %94 = tpu.matmul %91, %93, %cst_81 {dimension_numbers = #tpu.dot_dimension_numbers<[1], [0], [0], [1], [0, 0, 1, 1], [], []>} : vector<32x32xf32>, vector<32x32xf32>, vector<32x32xf32> -> vector<32x32xf32>
    %c1_82 = arith.constant 1 : index
    %c2_83 = arith.constant 2 : index
    %c0_84 = arith.constant 0 : index
    %c0_85 = arith.constant 0 : index
    %95 = vector.load %arg5[%c1_82, %c2_83, %c0_84, %c0_85] : memref<3x3x1x32xf32, #tpu.memory_space<vmem>>, vector<1x1x1x32xf32>
    %96 = vector.shape_cast %95 : vector<1x1x1x32xf32> to vector<1x32xf32>
    %97 = vector.broadcast %96 : vector<1x32xf32> to vector<32x32xf32>
    %98 = arith.addf %94, %97 : vector<32x32xf32>
    %cst_86 = arith.constant 0.000000e+00 : f32
    %99 = vector.broadcast %cst_86 : f32 to vector<32x32xf32>
    %100 = arith.maximumf %98, %99 : vector<32x32xf32>
    %cst_87 = arith.constant dense<0.000000e+00> : vector<1x32xf32>
    %101 = tpu.matmul %2, %100, %cst_87 {dimension_numbers = #tpu.dot_dimension_numbers<[1], [0], [0], [1], [0, 0, 1, 1], [], []>} : vector<1x32xf32>, vector<32x32xf32>, vector<1x32xf32> -> vector<1x32xf32>
    %102 = arith.mulf %100, %100 : vector<32x32xf32>
    %cst_88 = arith.constant dense<0.000000e+00> : vector<1x32xf32>
    %103 = tpu.matmul %2, %102, %cst_88 {dimension_numbers = #tpu.dot_dimension_numbers<[1], [0], [0], [1], [0, 0, 1, 1], [], []>} : vector<1x32xf32>, vector<32x32xf32>, vector<1x32xf32> -> vector<1x32xf32>
    %cst_89 = arith.constant 3.125000e-02 : f32
    %104 = vector.broadcast %cst_89 : f32 to vector<1x32xf32>
    %105 = arith.mulf %101, %104 : vector<1x32xf32>
    %cst_90 = arith.constant 3.125000e-02 : f32
    %106 = vector.broadcast %cst_90 : f32 to vector<1x32xf32>
    %107 = arith.mulf %103, %106 : vector<1x32xf32>
    %108 = arith.mulf %105, %105 : vector<1x32xf32>
    %109 = arith.subf %107, %108 : vector<1x32xf32>
    %110 = vector.broadcast %105 : vector<1x32xf32> to vector<32x32xf32>
    %111 = arith.subf %100, %110 : vector<32x32xf32>
    %cst_91 = arith.constant 9.99999974E-6 : f32
    %112 = vector.broadcast %cst_91 : f32 to vector<1x32xf32>
    %113 = arith.addf %109, %112 : vector<1x32xf32>
    %114 = math.rsqrt %113 : vector<1x32xf32>
    %115 = vector.broadcast %114 : vector<1x32xf32> to vector<32x32xf32>
    %116 = arith.mulf %111, %115 : vector<32x32xf32>
    %c1_92 = arith.constant 1 : index
    %c0_93 = arith.constant 0 : index
    %c0_94 = arith.constant 0 : index
    %117 = vector.load %arg6[%c1_92, %c0_93, %c0_94] : memref<3x1x32xf32, #tpu.memory_space<vmem>>, vector<1x1x32xf32>
    %118 = vector.shape_cast %117 : vector<1x1x32xf32> to vector<1x32xf32>
    %119 = vector.broadcast %118 : vector<1x32xf32> to vector<32x32xf32>
    %120 = arith.mulf %116, %119 : vector<32x32xf32>
    %c1_95 = arith.constant 1 : index
    %c0_96 = arith.constant 0 : index
    %c0_97 = arith.constant 0 : index
    %121 = vector.load %arg7[%c1_95, %c0_96, %c0_97] : memref<3x1x32xf32, #tpu.memory_space<vmem>>, vector<1x1x32xf32>
    %122 = vector.shape_cast %121 : vector<1x1x32xf32> to vector<1x32xf32>
    %123 = vector.broadcast %122 : vector<1x32xf32> to vector<32x32xf32>
    %124 = arith.addf %120, %123 : vector<32x32xf32>
    %cst_98 = arith.constant dense<0.000000e+00> : vector<2x32xf32>
    %125 = tpu.matmul %1, %124, %cst_98 {dimension_numbers = #tpu.dot_dimension_numbers<[1], [0], [0], [1], [0, 0, 1, 1], [], []>} : vector<2x32xf32>, vector<32x32xf32>, vector<2x32xf32> -> vector<2x32xf32>
    %c1_99 = arith.constant 1 : index
    %c0_100 = arith.constant 0 : index
    %c0_101 = arith.constant 0 : index
    %126 = vector.load %arg9[%c1_99, %c0_100, %c0_101] : memref<3x32x8xf32, #tpu.memory_space<vmem>>, vector<1x32x8xf32>
    %127 = vector.shape_cast %126 : vector<1x32x8xf32> to vector<32x8xf32>
    %cst_102 = arith.constant dense<0.000000e+00> : vector<2x8xf32>
    %128 = tpu.matmul %125, %127, %cst_102 {dimension_numbers = #tpu.dot_dimension_numbers<[1], [0], [0], [1], [0, 0, 1, 1], [], []>} : vector<2x32xf32>, vector<32x8xf32>, vector<2x8xf32> -> vector<2x8xf32>
    %129 = arith.addf %71, %128 : vector<2x8xf32>
    %cst_103 = arith.constant dense<0.000000e+00> : vector<32x32xf32>
    %130 = tpu.matmul %0, %124, %cst_103 {dimension_numbers = #tpu.dot_dimension_numbers<[1], [0], [0], [1], [0, 0, 1, 1], [], []>} : vector<32x32xf32>, vector<32x32xf32>, vector<32x32xf32> -> vector<32x32xf32>
    %131 = arith.addf %124, %130 : vector<32x32xf32>
    %c2_104 = arith.constant 2 : index
    %c0_105 = arith.constant 0 : index
    %c0_106 = arith.constant 0 : index
    %c0_107 = arith.constant 0 : index
    %132 = vector.load %arg4[%c2_104, %c0_105, %c0_106, %c0_107] : memref<3x3x32x32xf32, #tpu.memory_space<vmem>>, vector<1x1x32x32xf32>
    %133 = vector.shape_cast %132 : vector<1x1x32x32xf32> to vector<32x32xf32>
    %cst_108 = arith.constant dense<0.000000e+00> : vector<32x32xf32>
    %134 = tpu.matmul %131, %133, %cst_108 {dimension_numbers = #tpu.dot_dimension_numbers<[1], [0], [0], [1], [0, 0, 1, 1], [], []>} : vector<32x32xf32>, vector<32x32xf32>, vector<32x32xf32> -> vector<32x32xf32>
    %c2_109 = arith.constant 2 : index
    %c0_110 = arith.constant 0 : index
    %c0_111 = arith.constant 0 : index
    %c0_112 = arith.constant 0 : index
    %135 = vector.load %arg5[%c2_109, %c0_110, %c0_111, %c0_112] : memref<3x3x1x32xf32, #tpu.memory_space<vmem>>, vector<1x1x1x32xf32>
    %136 = vector.shape_cast %135 : vector<1x1x1x32xf32> to vector<1x32xf32>
    %137 = vector.broadcast %136 : vector<1x32xf32> to vector<32x32xf32>
    %138 = arith.addf %134, %137 : vector<32x32xf32>
    %cst_113 = arith.constant 0.000000e+00 : f32
    %139 = vector.broadcast %cst_113 : f32 to vector<32x32xf32>
    %140 = arith.maximumf %138, %139 : vector<32x32xf32>
    %c2_114 = arith.constant 2 : index
    %c1_115 = arith.constant 1 : index
    %c0_116 = arith.constant 0 : index
    %c0_117 = arith.constant 0 : index
    %141 = vector.load %arg4[%c2_114, %c1_115, %c0_116, %c0_117] : memref<3x3x32x32xf32, #tpu.memory_space<vmem>>, vector<1x1x32x32xf32>
    %142 = vector.shape_cast %141 : vector<1x1x32x32xf32> to vector<32x32xf32>
    %cst_118 = arith.constant dense<0.000000e+00> : vector<32x32xf32>
    %143 = tpu.matmul %140, %142, %cst_118 {dimension_numbers = #tpu.dot_dimension_numbers<[1], [0], [0], [1], [0, 0, 1, 1], [], []>} : vector<32x32xf32>, vector<32x32xf32>, vector<32x32xf32> -> vector<32x32xf32>
    %c2_119 = arith.constant 2 : index
    %c1_120 = arith.constant 1 : index
    %c0_121 = arith.constant 0 : index
    %c0_122 = arith.constant 0 : index
    %144 = vector.load %arg5[%c2_119, %c1_120, %c0_121, %c0_122] : memref<3x3x1x32xf32, #tpu.memory_space<vmem>>, vector<1x1x1x32xf32>
    %145 = vector.shape_cast %144 : vector<1x1x1x32xf32> to vector<1x32xf32>
    %146 = vector.broadcast %145 : vector<1x32xf32> to vector<32x32xf32>
    %147 = arith.addf %143, %146 : vector<32x32xf32>
    %cst_123 = arith.constant 0.000000e+00 : f32
    %148 = vector.broadcast %cst_123 : f32 to vector<32x32xf32>
    %149 = arith.maximumf %147, %148 : vector<32x32xf32>
    %c2_124 = arith.constant 2 : index
    %c2_125 = arith.constant 2 : index
    %c0_126 = arith.constant 0 : index
    %c0_127 = arith.constant 0 : index
    %150 = vector.load %arg4[%c2_124, %c2_125, %c0_126, %c0_127] : memref<3x3x32x32xf32, #tpu.memory_space<vmem>>, vector<1x1x32x32xf32>
    %151 = vector.shape_cast %150 : vector<1x1x32x32xf32> to vector<32x32xf32>
    %cst_128 = arith.constant dense<0.000000e+00> : vector<32x32xf32>
    %152 = tpu.matmul %149, %151, %cst_128 {dimension_numbers = #tpu.dot_dimension_numbers<[1], [0], [0], [1], [0, 0, 1, 1], [], []>} : vector<32x32xf32>, vector<32x32xf32>, vector<32x32xf32> -> vector<32x32xf32>
    %c2_129 = arith.constant 2 : index
    %c2_130 = arith.constant 2 : index
    %c0_131 = arith.constant 0 : index
    %c0_132 = arith.constant 0 : index
    %153 = vector.load %arg5[%c2_129, %c2_130, %c0_131, %c0_132] : memref<3x3x1x32xf32, #tpu.memory_space<vmem>>, vector<1x1x1x32xf32>
    %154 = vector.shape_cast %153 : vector<1x1x1x32xf32> to vector<1x32xf32>
    %155 = vector.broadcast %154 : vector<1x32xf32> to vector<32x32xf32>
    %156 = arith.addf %152, %155 : vector<32x32xf32>
    %cst_133 = arith.constant 0.000000e+00 : f32
    %157 = vector.broadcast %cst_133 : f32 to vector<32x32xf32>
    %158 = arith.maximumf %156, %157 : vector<32x32xf32>
    %cst_134 = arith.constant dense<0.000000e+00> : vector<1x32xf32>
    %159 = tpu.matmul %2, %158, %cst_134 {dimension_numbers = #tpu.dot_dimension_numbers<[1], [0], [0], [1], [0, 0, 1, 1], [], []>} : vector<1x32xf32>, vector<32x32xf32>, vector<1x32xf32> -> vector<1x32xf32>
    %160 = arith.mulf %158, %158 : vector<32x32xf32>
    %cst_135 = arith.constant dense<0.000000e+00> : vector<1x32xf32>
    %161 = tpu.matmul %2, %160, %cst_135 {dimension_numbers = #tpu.dot_dimension_numbers<[1], [0], [0], [1], [0, 0, 1, 1], [], []>} : vector<1x32xf32>, vector<32x32xf32>, vector<1x32xf32> -> vector<1x32xf32>
    %cst_136 = arith.constant 3.125000e-02 : f32
    %162 = vector.broadcast %cst_136 : f32 to vector<1x32xf32>
    %163 = arith.mulf %159, %162 : vector<1x32xf32>
    %cst_137 = arith.constant 3.125000e-02 : f32
    %164 = vector.broadcast %cst_137 : f32 to vector<1x32xf32>
    %165 = arith.mulf %161, %164 : vector<1x32xf32>
    %166 = arith.mulf %163, %163 : vector<1x32xf32>
    %167 = arith.subf %165, %166 : vector<1x32xf32>
    %168 = vector.broadcast %163 : vector<1x32xf32> to vector<32x32xf32>
    %169 = arith.subf %158, %168 : vector<32x32xf32>
    %cst_138 = arith.constant 9.99999974E-6 : f32
    %170 = vector.broadcast %cst_138 : f32 to vector<1x32xf32>
    %171 = arith.addf %167, %170 : vector<1x32xf32>
    %172 = math.rsqrt %171 : vector<1x32xf32>
    %173 = vector.broadcast %172 : vector<1x32xf32> to vector<32x32xf32>
    %174 = arith.mulf %169, %173 : vector<32x32xf32>
    %c2_139 = arith.constant 2 : index
    %c0_140 = arith.constant 0 : index
    %c0_141 = arith.constant 0 : index
    %175 = vector.load %arg6[%c2_139, %c0_140, %c0_141] : memref<3x1x32xf32, #tpu.memory_space<vmem>>, vector<1x1x32xf32>
    %176 = vector.shape_cast %175 : vector<1x1x32xf32> to vector<1x32xf32>
    %177 = vector.broadcast %176 : vector<1x32xf32> to vector<32x32xf32>
    %178 = arith.mulf %174, %177 : vector<32x32xf32>
    %c2_142 = arith.constant 2 : index
    %c0_143 = arith.constant 0 : index
    %c0_144 = arith.constant 0 : index
    %179 = vector.load %arg7[%c2_142, %c0_143, %c0_144] : memref<3x1x32xf32, #tpu.memory_space<vmem>>, vector<1x1x32xf32>
    %180 = vector.shape_cast %179 : vector<1x1x32xf32> to vector<1x32xf32>
    %181 = vector.broadcast %180 : vector<1x32xf32> to vector<32x32xf32>
    %182 = arith.addf %178, %181 : vector<32x32xf32>
    %cst_145 = arith.constant dense<0.000000e+00> : vector<2x32xf32>
    %183 = tpu.matmul %1, %182, %cst_145 {dimension_numbers = #tpu.dot_dimension_numbers<[1], [0], [0], [1], [0, 0, 1, 1], [], []>} : vector<2x32xf32>, vector<32x32xf32>, vector<2x32xf32> -> vector<2x32xf32>
    %c2_146 = arith.constant 2 : index
    %c0_147 = arith.constant 0 : index
    %c0_148 = arith.constant 0 : index
    %184 = vector.load %arg9[%c2_146, %c0_147, %c0_148] : memref<3x32x8xf32, #tpu.memory_space<vmem>>, vector<1x32x8xf32>
    %185 = vector.shape_cast %184 : vector<1x32x8xf32> to vector<32x8xf32>
    %cst_149 = arith.constant dense<0.000000e+00> : vector<2x8xf32>
    %186 = tpu.matmul %183, %185, %cst_149 {dimension_numbers = #tpu.dot_dimension_numbers<[1], [0], [0], [1], [0, 0, 1, 1], [], []>} : vector<2x32xf32>, vector<32x8xf32>, vector<2x8xf32> -> vector<2x8xf32>
    %187 = arith.addf %129, %186 : vector<2x8xf32>
    %c0_150 = arith.constant 0 : index
    %c0_151 = arith.constant 0 : index
    %188 = vector.load %arg11[%c0_150, %c0_151] : memref<2x8xf32, #tpu.memory_space<vmem>>, vector<2x8xf32>
    tpu.vector_store %arg11[%c0_150, %c0_151], %187 {strides = array<i32>} : memref<2x8xf32, #tpu.memory_space<vmem>>, vector<2x8xf32>,
    return
  }
}

</mosaic_0001>

<bundles_post_ra>
// kernel: tpu_custom_call.1
= control target key start
LH: loop header
LB: loop body
LE: loop exit
PB: predicated region body
PF: predicated region fallthrough
CT: control target
= control target key end

     0   :  { %16 = vsyncpa [#allocation3], 0  ;;  %s1589_s0 = inlined_call_operand.vmem [shape: f32[32,32], index: 0, kind: input, shape index: {}]   ;;  %s1590_s1 = inlined_call_operand.vmem [shape: f32[32,1], index: 1, kind: input, shape index: {}]   ;;  %s1591_s2 = inlined_call_operand.vmem [shape: f32[1,32], index: 2, kind: input, shape index: {}]   ;;  %s1592_s3 = inlined_call_operand.vmem [shape: f32[1,32], index: 3, kind: input, shape index: {}]   ;;  %s1593_s4 = inlined_call_operand.hbm [shape: f32[3,3,32,32], index: 4, kind: input, shape index: {}]   ;;  %s1594_s5 = inlined_call_operand.vmem [shape: f32[3,3,1,32], index: 5, kind: input, shape index: {}]   ;;  %s1595_s6 = inlined_call_operand.vmem [shape: f32[3,1,32], index: 6, kind: input, shape index: {}]   ;;  %s1596_s7 = inlined_call_operand.vmem [shape: f32[3,1,32], index: 7, kind: input, shape index: {}]   ;;  %s1597_s8 = inlined_call_operand.vmem [shape: f32[2,32], index: 8, kind: input, shape index: {}]   ;;  %s1598_s9 = inlined_call_operand.vmem [shape: f32[3,32,8], index: 9, kind: input, shape index: {}]   ;;  %s1599_s10 = inlined_call_operand.vmem [shape: f32[1,8], index: 10, kind: input, shape index: {}]   ;;  %s1600_s11 = inlined_call_operand.hbm [shape: f32[2,8], index: 11, kind: output, shape index: {}]  }
   0x1   :  { %17 = vsyncpa [#allocation4], 0  ;;  %s30_s19 = sshll.u32 %s1593_s4, 4  ;;  %s1303_s20 = smov [#allocation2]   ;;  %s31_s19 = int_to_ptr.hbm [resolvable:$true] %s30_s19 }
   0x2   :  { %s32_s21 = sshll.u32 %s1303_s20, 4  ;;  %s1304_s22 = smov 128   ;;  %s33_s21 = int_to_ptr.vmem [resolvable:$true] %s32_s21 }
   0x3   :  { %s1305_s23 = smov 8  }
   0x4   :  { %38 = dma.hbm_to_vmem [thread:$0]  %s31_s19, 4608, %s33_s21, [#allocation3], %s1304_s22, %s1304_s22, %s1305_s23  }
   0x5   :  { %1299 = dma.done.wait [#allocation3], 4608  }
   0x6   :  { %1300 = vsyncadd [#allocation3], 4294962688  ;;  %v1306_v0 = vmov 0   ;;  %v63_v1 = vld [vmem:[%s1590_s1 + $0x18] sm:$0xff]  ;;  %v61_v2 = vld [vmem:[%s1590_s1 + $0x8] sm:$0xff]  ;;  %vm104_vm0 = vcmask 261120  }
   0x7   :  { %1226 = vset.pattern.permute.xlu1 %v1306_v0  ;;  %1225 = vset.pattern.permute.xlu0 %v1306_v0  ;;  %v62_v3 = vld [vmem:[%s1590_s1 + $0x10] sm:$0xff]  ;;  %v60_v4 = vld [vmem:[%s1590_s1] sm:$0xff]  ;;  %v153_v15 = vld [vmem:[#allocation2 + $0x18] sm:$0xff]  ;;  %s1308_s25 = smov [#allocation5]   ;;  %s1129_s28 = sshll.u32 %s1600_s11, 4  ;;  %vm1120_vm10 = vcmask 58368   ;;  %s1130_s28 = int_to_ptr.hbm [resolvable:$true] %s1129_s28 }
   0x8   :  { %82 = vperm.xlu0 %1225, %v63_v1   ;;  %72 = vperm.xlu1 %1226, %v61_v2   ;;  %v1227_v5 = vld [vmem:[%s1591_s2] ss:$0 sm:$0xff]  ;;  %v152_v16 = vld [vmem:[#allocation2 + $0x10] sm:$0xff]  ;;  %v1400_v22 = vld [vmem:[%s1589_s0 + $0x8] sm:$0xff]  ;;  %s1127_s26 = sshll.u32 %s1308_s25, 4  ;;  %s1128_s26 = int_to_ptr.vmem [resolvable:$true] %s1127_s26 }
   0x9   :  { %v1228_v6 = vld [vmem:[%s1592_s3] ss:$0 sm:$0xff]  ;;  %182 = vmatpush.msra.mxu1 %v153_v15  ;;  %v1407_v23 = vld [vmem:[%s1589_s0 + $0x10] sm:$0xff]  ;;  %v1414_v24 = vld [vmem:[%s1589_s0 + $0x18] sm:$0xff] }
   0xa   :  { %v1393_v21 = vld [vmem:[%s1589_s0] sm:$0xff]  ;;  %v151_v25 = vld [vmem:[#allocation2 + $0x8] sm:$0xff]  ;;  %v207_v27 = vld [vmem:[#allocation2 + $0x38] sm:$0xff] }
   0xb   :  { %183 = vmatpush.msra.mxu1 %v152_v16  ;;  %v150_v26 = vld [vmem:[#allocation2] sm:$0xff]  ;;  %237 = vmatpush.msra.mxu2 %v207_v27  ;;  %v206_v36 = vld [vmem:[#allocation2 + $0x30] sm:$0xff]  ;;  %v205_v37 = vld [vmem:[#allocation2 + $0x28] sm:$0xff] }
   0xc   :  { %v204_v38 = vld [vmem:[#allocation2 + $0x20] sm:$0xff]  ;;  %v262_v40 = vld [vmem:[#allocation2 + $0x58] sm:$0xff]  ;;  %v261_v53 = vld [vmem:[#allocation2 + $0x50] sm:$0xff] }
   0xd   :  { %184 = vmatpush.msra.mxu1 %v151_v25  ;;  %238 = vmatpush.msra.mxu2 %v206_v36  ;;  %v1229_v39 = vld [vmem:[%s1594_s5] ss:$0 sm:$0xff]  ;;  %v260_v54 = vld [vmem:[#allocation2 + $0x48] sm:$0xff]  ;;  %v1230_v56 = vld [vmem:[%s1594_s5 + $0x1] ss:$0 sm:$0xff] }
   0xe   :  { %292 = vmatpush.msra.mxu3 %v262_v40  ;;  %v259_v55 = vld [vmem:[#allocation2 + $0x40] sm:$0xff] }
   0xf   :  { %185 = vmatpush.msra.mxu1 %v150_v26  ;;  %239 = vmatpush.msra.mxu2 %v205_v37  ;;  %v1307_v26 = vmov 1.0  }
  0x10   :  { %77 = vperm.xlu0 %1225, %v62_v3   ;;  %67 = vperm.xlu1 %1226, %v60_v4  }
  0x11   :  { %240 = vmatpush.msra.mxu2 %v204_v38  ;;  %293 = vmatpush.msra.mxu3 %v261_v53 }
  0x13   :  { %294 = vmatpush.msra.mxu3 %v260_v54 }
  0x15   :  { %295 = vmatpush.msra.mxu3 %v259_v55 }
  0x7a   :  { %v83_v7 = vpop.permute.xlu0 %82  ;;  %v73_v8 = vpop.permute.xlu1 %72 }
  0x7b   :  { %v91_v9 = vmul.f32 %v1227_v5, %v83_v7  ;;  %v89_v13 = vmul.f32 %v1227_v5, %v73_v8  ;;  %v1231_v8 = vld [vmem:[%s1594_s5 + $0x2] ss:$0 sm:$0xff] }
  0x7d   :  { %v99_v10 = vadd.f32 %v1228_v6, %v91_v9  ;;  %v97_v19 = vadd.f32 %v1228_v6, %v89_v13 }
  0x7f   :  { %129 = vmatpush.msra.mxu0 %v99_v10 }
  0x82   :  { %v78_v11 = vpop.permute.xlu0 %77  ;;  %v68_v12 = vpop.permute.xlu1 %67 }
  0x83   :  { %v90_v14 = vmul.f32 %v1227_v5, %v78_v11  ;;  %v88_v17 = vmul.f32 %v1227_v5, %v68_v12 }
  0x85   :  { %v98_v18 = vadd.f32 %v1228_v6, %v90_v14  ;;  %v96_v20 = vadd.f32 %v1228_v6, %v88_v17 }
  0x87   :  { %130 = vmatpush.msra.mxu0 %v98_v18 }
  0x89   :  { %131 = vmatpush.msra.mxu0 %v97_v19 }
  0x8b   :  { %132 = vmatpush.msra.mxu0 %v96_v20 }
  0x8c   :  { %1139 = vmatmul.msk.f32.vlgmr.msra.gmra.mxu0 %vm104_vm0, %v1393_v21 }
  0x94   :  { %1140 = vmatmul.msk.f32.gmra.mxu0 %vm104_vm0, %v1400_v22 }
  0x9c   :  { %1141 = vmatmul.msk.f32.gmra.mxu0 %vm104_vm0, %v1407_v23 }
  0xa4   :  { %1142 = vmatmul.msk.f32.gmra.mxu0 %vm104_vm0, %v1414_v24 }
 0x109   :  { %v134_v28 = vpop.f32.mrf.mxu0 }
 0x10a   :  { %v146_v29 = vadd.f32 %v134_v28, %v96_v20 }
 0x10c   :  { %1143 = vmatmul.msk.f32.vlgmr.msra.gmra.mxu1 %vm104_vm0, %v146_v29 }
 0x111   :  { %v137_v30 = vpop.f32.mrf.mxu0 }
 0x112   :  { %v147_v31 = vadd.f32 %v137_v30, %v97_v19 }
 0x114   :  { %1144 = vmatmul.msk.f32.gmra.mxu1 %vm104_vm0, %v147_v31 }
 0x119   :  { %v140_v32 = vpop.f32.mrf.mxu0 }
 0x11a   :  { %v148_v33 = vadd.f32 %v140_v32, %v98_v18 }
 0x11c   :  { %1145 = vmatmul.msk.f32.gmra.mxu1 %vm104_vm0, %v148_v33 }
 0x121   :  { %v143_v34 = vpop.f32.mrf.mxu0 }
 0x122   :  { %v149_v35 = vadd.f32 %v143_v34, %v99_v10 }
 0x124   :  { %1146 = vmatmul.msk.f32.gmra.mxu1 %vm104_vm0, %v149_v35 }
 0x189   :  { %v187_v41 = vpop.f32.mrf.mxu1 }
 0x18a   :  { %v188_v42 = vadd.f32 %v1229_v39, %v187_v41 }
 0x18c   :  { %v199_v43 = vmax.f32 %v188_v42, 0.0 }
 0x18e   :  { %1148 = vmatmul.msk.f32.vlgmr.msra.gmra.mxu2 %vm104_vm0, %v199_v43 }
 0x191   :  { %v190_v44 = vpop.f32.mrf.mxu1 }
 0x192   :  { %v191_v45 = vadd.f32 %v1229_v39, %v190_v44  ;;  %v1232_v44 = vld [vmem:[%s1595_s6] ss:$0 sm:$0xff] }
 0x194   :  { %v200_v46 = vmax.f32 %v191_v45, 0.0 }
 0x196   :  { %1149 = vmatmul.msk.f32.gmra.mxu2 %vm104_vm0, %v200_v46 }
 0x199   :  { %v193_v47 = vpop.f32.mrf.mxu1 }
 0x19a   :  { %v194_v48 = vadd.f32 %v1229_v39, %v193_v47 }
 0x19c   :  { %v201_v49 = vmax.f32 %v194_v48, 0.0  ;;  %v1233_v48 = vld [vmem:[%s1596_s7] ss:$0 sm:$0xff] }
 0x19e   :  { %1150 = vmatmul.msk.f32.gmra.mxu2 %vm104_vm0, %v201_v49 }
 0x1a1   :  { %v196_v50 = vpop.f32.mrf.mxu1 }
 0x1a2   :  { %v197_v51 = vadd.f32 %v1229_v39, %v196_v50 }
 0x1a4   :  { %v202_v52 = vmax.f32 %v197_v51, 0.0 }
 0x1a6   :  { %1151 = vmatmul.msk.f32.gmra.mxu2 %vm104_vm0, %v202_v52 }
 0x211   :  { %v242_v57 = vpop.f32.mrf.mxu2 }
 0x212   :  { %v243_v58 = vadd.f32 %v1230_v56, %v242_v57  ;;  %v489_v57 = vld [vmem:[#allocation2 + $0x78] sm:$0xff] }
 0x214   :  { %v254_v59 = vmax.f32 %v243_v58, 0.0 }
 0x216   :  { %1153 = vmatmul.msk.f32.vlgmr.msra.gmra.mxu3 %vm104_vm0, %v254_v59 }
 0x219   :  { %v245_v60 = vpop.f32.mrf.mxu2 }
 0x21a   :  { %v246_v61 = vadd.f32 %v1230_v56, %v245_v60  ;;  %v488_v60 = vld [vmem:[#allocation2 + $0x70] sm:$0xff] }
 0x21c   :  { %v255_v62 = vmax.f32 %v246_v61, 0.0 }
 0x21e   :  { %1154 = vmatmul.msk.f32.gmra.mxu3 %vm104_vm0, %v255_v62 }
 0x221   :  { %v248_v63 = vpop.f32.mrf.mxu2 }
 0x222   :  { %v249_v0 = vadd.f32 %v1230_v56, %v248_v63  ;;  %v487_v63 = vld [vmem:[#allocation2 + $0x68] sm:$0xff] }
 0x224   :  { %v256_v1 = vmax.f32 %v249_v0, 0.0  ;;  %v486_v0 = vld [vmem:[#allocation2 + $0x60] sm:$0xff] }
 0x226   :  { %1155 = vmatmul.msk.f32.gmra.mxu3 %vm104_vm0, %v256_v1  ;;  %v1460_v1 = vld [vmem:[%s1597_s8] sm:$0x3] }
 0x229   :  { %v251_v2 = vpop.f32.mrf.mxu2 }
 0x22a   :  { %v252_v3 = vadd.f32 %v1230_v56, %v251_v2  ;;  %v544_v2 = vld [vmem:[#allocation2 + $0x98] sm:$0xff] }
 0x22c   :  { %v257_v4 = vmax.f32 %v252_v3, 0.0 }
 0x22e   :  { %1156 = vmatmul.msk.f32.gmra.mxu3 %vm104_vm0, %v257_v4 }
 0x299   :  { %v297_v5 = vpop.f32.mrf.mxu3 }
 0x29a   :  { %v298_v13 = vadd.f32 %v1231_v8, %v297_v5 }
 0x29c   :  { %v309_v18 = vmax.f32 %v298_v13, 0.0  ;;  %v541_v13 = vld [vmem:[#allocation2 + $0x80] sm:$0xff] }
 0x29e   :  { %v336_v25 = vmul.f32 %v309_v18, %v309_v18 }
 0x2a1   :  { %v300_v6 = vpop.f32.mrf.mxu3 }
 0x2a2   :  { %v301_v11 = vadd.f32 %v1231_v8, %v300_v6 }
 0x2a4   :  { %v310_v16 = vmax.f32 %v301_v11, 0.0  ;;  %v543_v11 = vld [vmem:[#allocation2 + $0x90] sm:$0xff] }
 0x2a6   :  { %v337_v20 = vmul.f32 %v310_v16, %v310_v16 }
 0x2a9   :  { %v303_v7 = vpop.f32.mrf.mxu3 }
 0x2aa   :  { %v304_v9 = vadd.f32 %v1231_v8, %v303_v7 }
 0x2ac   :  { %v311_v14 = vmax.f32 %v304_v9, 0.0 }
 0x2ae   :  { %v338_v19 = vmul.f32 %v311_v14, %v311_v14 }
 0x2b1   :  { %v306_v10 = vpop.f32.mrf.mxu3 }
 0x2b2   :  { %v307_v12 = vadd.f32 %v1231_v8, %v306_v10 }
 0x2b4   :  { %v312_v15 = vmax.f32 %v307_v12, 0.0  ;;  %v542_v12 = vld [vmem:[#allocation2 + $0x88] sm:$0xff] }
 0x2b6   :  { %328 = vmatpush.msrb.mxu0 %v312_v15  ;;  %v339_v17 = vmul.f32 %v312_v15, %v312_v15 }
 0x2b8   :  { %329 = vmatpush.msrb.mxu0 %v311_v14  ;;  %352 = vmatpush.msrb.mxu1 %v339_v17  ;;  %v425_v17 = vld [vmem:[%s1598_s9 + $0x8] sm:$0xff] }
 0x2ba   :  { %330 = vmatpush.msrb.mxu0 %v310_v16  ;;  %353 = vmatpush.msrb.mxu1 %v338_v19 }
 0x2bc   :  { %331 = vmatpush.msrb.mxu0 %v309_v18  ;;  %354 = vmatpush.msrb.mxu1 %v337_v20  ;;  %v424_v20 = vld [vmem:[%s1598_s9] sm:$0xff] }
 0x2bd   :  { %1157 = vmatmul.msk.f32.vlgmr.msrb.gmra.mxu0 %vm104_vm0, %v1307_v26 }
 0x2be   :  { %355 = vmatpush.msrb.mxu1 %v336_v25 }
 0x2bf   :  { %1158 = vmatmul.msk.f32.vlgmr.msrb.gmra.mxu1 %vm104_vm0, %v1307_v26 }
 0x2c0   :  { %519 = vmatpush.msra.mxu1 %v489_v57 }
 0x2c2   :  { %520 = vmatpush.msra.mxu1 %v488_v60 }
 0x2c4   :  { %521 = vmatpush.msra.mxu1 %v487_v63 }
 0x2c6   :  { %522 = vmatpush.msra.mxu1 %v486_v0 }
 0x33a   :  { %v333_v27 = vpop.f32.mrf.mxu0 }
 0x33b   :  { %v360_v28 = vmul.f32 0.03125, %v333_v27 }
 0x33c   :  { %v357_v29 = vpop.f32.mrf.mxu1 }
 0x33d   :  { %v362_v30 = vmul.f32 %v360_v28, %v360_v28  ;;  %v361_v31 = vmul.f32 0.03125, %v357_v29  ;;  %v364_v39 = vperm.slane %v360_v28, 0  ;;  %v599_v28 = vld [vmem:[#allocation2 + $0xb8] sm:$0xff] }
 0x33f   :  { %v363_v32 = vsub.f32 %v361_v31, %v362_v30  ;;  %v368_v43 = vsub.f32 %v312_v15, %v364_v39  ;;  %v367_v45 = vsub.f32 %v311_v14, %v364_v39  ;;  %v366_v46 = vsub.f32 %v310_v16, %v364_v39  ;;  %v1234_v14 = vld [vmem:[%s1594_s5 + $0x3] ss:$0 sm:$0xff]  ;;  %v427_v15 = vld [vmem:[%s1598_s9 + $0x18] sm:$0xff]  ;;  %v426_v16 = vld [vmem:[%s1598_s9 + $0x10] sm:$0xff] }
 0x340   :  { %v365_v51 = vsub.f32 %v309_v18, %v364_v39  ;;  %443 = vmatpush.msrb.mxu3 %v427_v15  ;;  %v597_v39 = vld [vmem:[#allocation2 + $0xa8] sm:$0xff] }
 0x341   :  { %v369_v33 = vadd.f32 1e-05, %v363_v32 }
 0x342   :  { %444 = vmatpush.msrb.mxu3 %v426_v16 }
 0x343   :  { %1245 = vrsqrt.f32 %v369_v33  ;;  %vm376_vm2 = vweird.f32 %v369_v33 }
 0x344   :  { %445 = vmatpush.msrb.mxu3 %v425_v17 }
 0x346   :  { %446 = vmatpush.msrb.mxu3 %v424_v20 }
 0x348   :  { %629 = vmatpush.msra.mxu3 %v599_v28 }
 0x349   :  { %v1246_v34 = vpop.eup %1245 }
 0x34a   :  { %v371_v35 = vmul.f32 %v1246_v34, %v369_v33  ;;  %vm377_vm1 = vweird.f32 %v1246_v34 }
 0x34b   :  { %vm378_vm3 = vmor %vm376_vm2, %vm377_vm1 }
 0x34c   :  { %v372_v36 = vmul.f32 %v1246_v34, %v371_v35 }
 0x34e   :  { %v373_v37 = vmul.f32 0.5, %v372_v36 }
 0x350   :  { %v374_v38 = vsub.f32 1.5, %v373_v37 }
 0x352   :  { %v375_v40 = vmul.f32 %v1246_v34, %v374_v38  ;;  %v598_v38 = vld [vmem:[#allocation2 + $0xb0] sm:$0xff] }
 0x353   :  { %630 = vmatpush.msra.mxu3 %v598_v38 }
 0x354   :  { %v379_v41 = vsel %vm378_vm3, %v1246_v34, %v375_v40  ;;  %v596_v40 = vld [vmem:[#allocation2 + $0xa0] sm:$0xff] }
 0x355   :  { %v380_v42 = vperm.slane %v379_v41, 0  ;;  %631 = vmatpush.msra.mxu3 %v597_v39  ;;  %v1235_v41 = vld [vmem:[%s1594_s5 + $0x4] ss:$0 sm:$0xff] }
 0x357   :  { %v384_v47 = vmul.f32 %v380_v42, %v368_v43  ;;  %v383_v49 = vmul.f32 %v380_v42, %v367_v45  ;;  %v382_v50 = vmul.f32 %v380_v42, %v366_v46  ;;  %v381_v54 = vmul.f32 %v380_v42, %v365_v51  ;;  %632 = vmatpush.msra.mxu3 %v596_v40 }
 0x359   :  { %v392_v52 = vmul.f32 %v1232_v44, %v384_v47  ;;  %v391_v53 = vmul.f32 %v1232_v44, %v383_v49  ;;  %v390_v56 = vmul.f32 %v1232_v44, %v382_v50  ;;  %v389_v59 = vmul.f32 %v1232_v44, %v381_v54 }
 0x35b   :  { %v400_v55 = vadd.f32 %v1233_v48, %v392_v52  ;;  %v399_v58 = vadd.f32 %v1233_v48, %v391_v53  ;;  %v398_v61 = vadd.f32 %v1233_v48, %v390_v56  ;;  %v397_v62 = vadd.f32 %v1233_v48, %v389_v59 }
 0x35d   :  { %416 = vmatpush.msrb.mxu2 %v400_v55  ;;  %464 = vmatpush.msra.mxu0 %v400_v55 }
 0x35f   :  { %417 = vmatpush.msrb.mxu2 %v399_v58  ;;  %465 = vmatpush.msra.mxu0 %v399_v58 }
 0x361   :  { %418 = vmatpush.msrb.mxu2 %v398_v61  ;;  %466 = vmatpush.msra.mxu0 %v398_v61 }
 0x363   :  { %419 = vmatpush.msrb.mxu2 %v397_v62  ;;  %467 = vmatpush.msra.mxu0 %v397_v62 }
 0x364   :  { %1161 = vmatmul.msk.f32.vlgmr.msra.gmra.mxu0 %vm104_vm0, %v1393_v21  ;;  %1159 = vmatmul.msk.f32.vlgmr.msrb.gmra.mxu2 %vm104_vm0, %v1460_v1 }
 0x365   :  { %574 = vmatpush.msra.mxu2 %v544_v2 }
 0x367   :  { %575 = vmatpush.msra.mxu2 %v543_v11 }
 0x369   :  { %576 = vmatpush.msra.mxu2 %v542_v12 }
 0x36b   :  { %577 = vmatpush.msra.mxu2 %v541_v13 }
 0x36c   :  { %1162 = vmatmul.msk.f32.gmra.mxu0 %vm104_vm0, %v1400_v22 }
 0x374   :  { %1163 = vmatmul.msk.f32.gmra.mxu0 %vm104_vm0, %v1407_v23 }
 0x37c   :  { %1164 = vmatmul.msk.f32.gmra.mxu0 %vm104_vm0, %v1414_v24 }
 0x3e1   :  { %v469_v3 = vpop.f32.mrf.mxu0 }
 0x3e2   :  { %v481_v4 = vadd.f32 %v469_v3, %v397_v62 }
 0x3e4   :  { %1166 = vmatmul.msk.f32.vlgmr.msra.gmra.mxu1 %vm104_vm0, %v481_v4 }
 0x3e7   :  { %v421_v25 = vpop.f32.mrf.mxu2 }
 0x3e8   :  { %1160 = vmatmul.msk.f32.vlgmr.msrb.gmra.mxu3 %vm104_vm0, %v421_v25 }
 0x3e9   :  { %v472_v5 = vpop.f32.mrf.mxu0 }
 0x3ea   :  { %v482_v6 = vadd.f32 %v472_v5, %v398_v61 }
 0x3ec   :  { %1167 = vmatmul.msk.f32.gmra.mxu1 %vm104_vm0, %v482_v6 }
 0x3f1   :  { %v475_v7 = vpop.f32.mrf.mxu0 }
 0x3f2   :  { %v483_v8 = vadd.f32 %v475_v7, %v399_v58  ;;  %v1237_v58 = vld [vmem:[%s1594_s5 + $0x5] ss:$0 sm:$0xff] }
 0x3f4   :  { %1168 = vmatmul.msk.f32.gmra.mxu1 %vm104_vm0, %v483_v8 }
 0x3f9   :  { %v478_v9 = vpop.f32.mrf.mxu0 }
 0x3fa   :  { %v484_v10 = vadd.f32 %v478_v9, %v400_v55 }
 0x3fc   :  { %1169 = vmatmul.msk.f32.gmra.mxu1 %vm104_vm0, %v484_v10 }
 0x461   :  { %v524_v18 = vpop.f32.mrf.mxu1 }
 0x462   :  { %v525_v19 = vadd.f32 %v1234_v14, %v524_v18 }
 0x464   :  { %v536_v27 = vmax.f32 %v525_v19, 0.0 }
 0x466   :  { %1171 = vmatmul.msk.f32.vlgmr.msra.gmra.mxu2 %vm104_vm0, %v536_v27 }
 0x469   :  { %v527_v29 = vpop.f32.mrf.mxu1 }
 0x46a   :  { %v528_v30 = vadd.f32 %v1234_v14, %v527_v29 }
 0x46b   :  { %v1495_v54 = vpop.f32.mrf.mxu3 }
 0x46c   :  { %v537_v31 = vmax.f32 %v528_v30, 0.0 }
 0x46e   :  { %1172 = vmatmul.msk.f32.gmra.mxu2 %vm104_vm0, %v537_v31  ;;  %v1238_v31 = vld [vmem:[%s1595_s6 + $0x1] ss:$0 sm:$0xff] }
 0x471   :  { %v530_v32 = vpop.f32.mrf.mxu1 }
 0x472   :  { %v531_v33 = vadd.f32 %v1234_v14, %v530_v32 }
 0x474   :  { %v538_v34 = vmax.f32 %v531_v33, 0.0 }
 0x476   :  { %1173 = vmatmul.msk.f32.gmra.mxu2 %vm104_vm0, %v538_v34 }
 0x479   :  { %v533_v35 = vpop.f32.mrf.mxu1 }
 0x47a   :  { %v534_v36 = vadd.f32 %v1234_v14, %v533_v35  ;;  %v1239_v35 = vld [vmem:[%s1596_s7 + $0x1] ss:$0 sm:$0xff] }
 0x47c   :  { %v539_v37 = vmax.f32 %v534_v36, 0.0 }
 0x47e   :  { %1174 = vmatmul.msk.f32.gmra.mxu2 %vm104_vm0, %v539_v37 }
 0x4e9   :  { %v579_v42 = vpop.f32.mrf.mxu2 }
 0x4ea   :  { %v580_v43 = vadd.f32 %v1235_v41, %v579_v42 }
 0x4ec   :  { %v591_v44 = vmax.f32 %v580_v43, 0.0 }
 0x4ee   :  { %1176 = vmatmul.msk.f32.vlgmr.msra.gmra.mxu3 %vm104_vm0, %v591_v44  ;;  %v823_v44 = vld [vmem:[#allocation2 + $0xd8] sm:$0xff] }
 0x4f1   :  { %v582_v45 = vpop.f32.mrf.mxu2 }
 0x4f2   :  { %v583_v46 = vadd.f32 %v1235_v41, %v582_v45  ;;  %v1188_v45 = vld [vmem:[%s1598_s9 + $0x38] sm:$0xff] }
 0x4f3   :  { %777 = vmatpush.msrb.mxu3 %v1188_v45 }
 0x4f4   :  { %v592_v47 = vmax.f32 %v583_v46, 0.0 }
 0x4f6   :  { %1177 = vmatmul.msk.f32.gmra.mxu3 %vm104_vm0, %v592_v47 }
 0x4f9   :  { %v585_v48 = vpop.f32.mrf.mxu2 }
 0x4fa   :  { %v586_v49 = vadd.f32 %v1235_v41, %v585_v48  ;;  %v822_v48 = vld [vmem:[#allocation2 + $0xd0] sm:$0xff] }
 0x4fc   :  { %v593_v50 = vmax.f32 %v586_v49, 0.0 }
 0x4fe   :  { %1178 = vmatmul.msk.f32.gmra.mxu3 %vm104_vm0, %v593_v50 }
 0x501   :  { %v588_v51 = vpop.f32.mrf.mxu2 }
 0x502   :  { %v589_v52 = vadd.f32 %v1235_v41, %v588_v51  ;;  %v821_v51 = vld [vmem:[#allocation2 + $0xc8] sm:$0xff] }
 0x504   :  { %v594_v53 = vmax.f32 %v589_v52, 0.0  ;;  %v1187_v52 = vld [vmem:[%s1598_s9 + $0x30] sm:$0xff] }
 0x505   :  { %778 = vmatpush.msrb.mxu3 %v1187_v52 }
 0x506   :  { %1179 = vmatmul.msk.f32.gmra.mxu3 %vm104_vm0, %v594_v53  ;;  %v820_v53 = vld [vmem:[#allocation2 + $0xc0] sm:$0xff] }
 0x571   :  { %v634_v55 = vpop.f32.mrf.mxu3 }
 0x572   :  { %v635_v63 = vadd.f32 %v1237_v58, %v634_v55 }
 0x574   :  { %v646_v5 = vmax.f32 %v635_v63, 0.0  ;;  %v877_v63 = vld [vmem:[#allocation2 + $0xf0] sm:$0xff] }
 0x576   :  { %v670_v8 = vmul.f32 %v646_v5, %v646_v5 }
 0x579   :  { %v637_v56 = vpop.f32.mrf.mxu3 }
 0x57a   :  { %v638_v61 = vadd.f32 %v1237_v58, %v637_v56 }
 0x57c   :  { %v647_v3 = vmax.f32 %v638_v61, 0.0 }
 0x57e   :  { %v671_v7 = vmul.f32 %v647_v3, %v647_v3 }
 0x581   :  { %v640_v57 = vpop.f32.mrf.mxu3 }
 0x582   :  { %v641_v59 = vadd.f32 %v1237_v58, %v640_v57 }
 0x584   :  { %v648_v0 = vmax.f32 %v641_v59, 0.0 }
 0x586   :  { %v672_v6 = vmul.f32 %v648_v0, %v648_v0 }
 0x589   :  { %v643_v60 = vpop.f32.mrf.mxu3 }
 0x58a   :  { %v644_v62 = vadd.f32 %v1237_v58, %v643_v60 }
 0x58c   :  { %v649_v2 = vmax.f32 %v644_v62, 0.0 }
 0x58e   :  { %v673_v4 = vmul.f32 %v649_v2, %v649_v2  ;;  %662 = vmatpush.msrb.mxu0 %v649_v2 }
 0x590   :  { %663 = vmatpush.msrb.mxu0 %v648_v0  ;;  %686 = vmatpush.msrb.mxu1 %v673_v4  ;;  %v933_v4 = vld [vmem:[#allocation2 + $0x118] sm:$0xff] }
 0x592   :  { %664 = vmatpush.msrb.mxu0 %v647_v3  ;;  %687 = vmatpush.msrb.mxu1 %v672_v6 }
 0x594   :  { %665 = vmatpush.msrb.mxu0 %v646_v5  ;;  %688 = vmatpush.msrb.mxu1 %v671_v7 }
 0x595   :  { %1180 = vmatmul.msk.f32.vlgmr.msrb.gmra.mxu0 %vm104_vm0, %v1307_v26 }
 0x596   :  { %689 = vmatpush.msrb.mxu1 %v670_v8 }
 0x597   :  { %1181 = vmatmul.msk.f32.vlgmr.msrb.gmra.mxu1 %vm104_vm0, %v1307_v26 }
 0x598   :  { %853 = vmatpush.msra.mxu1 %v823_v44 }
 0x59a   :  { %854 = vmatpush.msra.mxu1 %v822_v48 }
 0x59c   :  { %855 = vmatpush.msra.mxu1 %v821_v51 }
 0x59e   :  { %856 = vmatpush.msra.mxu1 %v820_v53 }
 0x612   :  { %v667_v9 = vpop.f32.mrf.mxu0 }
 0x613   :  { %v694_v10 = vmul.f32 0.03125, %v667_v9 }
 0x614   :  { %v691_v11 = vpop.f32.mrf.mxu1 }
 0x615   :  { %v696_v12 = vmul.f32 %v694_v10, %v694_v10  ;;  %v695_v13 = vmul.f32 0.03125, %v691_v11  ;;  %v698_v25 = vperm.slane %v694_v10, 0 }
 0x617   :  { %v697_v14 = vsub.f32 %v695_v13, %v696_v12  ;;  %v702_v29 = vsub.f32 %v649_v2, %v698_v25  ;;  %v701_v32 = vsub.f32 %v648_v0, %v698_v25  ;;  %v700_v33 = vsub.f32 %v647_v3, %v698_v25  ;;  %v876_v0 = vld [vmem:[#allocation2 + $0xe8] sm:$0xff]  ;;  %v875_v2 = vld [vmem:[#allocation2 + $0xe0] sm:$0xff] }
 0x618   :  { %v699_v38 = vsub.f32 %v646_v5, %v698_v25  ;;  %v1240_v3 = vld [vmem:[%s1594_s5 + $0x6] ss:$0 sm:$0xff] }
 0x619   :  { %v703_v15 = vadd.f32 1e-05, %v697_v14 }
 0x61b   :  { %1247 = vrsqrt.f32 %v703_v15  ;;  %vm710_vm5 = vweird.f32 %v703_v15 }
 0x621   :  { %v1248_v16 = vpop.eup %1247 }
 0x622   :  { %v705_v17 = vmul.f32 %v1248_v16, %v703_v15  ;;  %vm711_vm4 = vweird.f32 %v1248_v16 }
 0x623   :  { %vm712_vm6 = vmor %vm710_vm5, %vm711_vm4 }
 0x624   :  { %v706_v18 = vmul.f32 %v1248_v16, %v705_v17  ;;  %v932_v17 = vld [vmem:[#allocation2 + $0x110] sm:$0xff] }
 0x626   :  { %v707_v19 = vmul.f32 0.5, %v706_v18  ;;  %v931_v18 = vld [vmem:[#allocation2 + $0x108] sm:$0xff] }
 0x628   :  { %v708_v20 = vsub.f32 1.5, %v707_v19  ;;  %v930_v19 = vld [vmem:[#allocation2 + $0x100] sm:$0xff] }
 0x62a   :  { %v709_v27 = vmul.f32 %v1248_v16, %v708_v20  ;;  %v1241_v20 = vld [vmem:[%s1594_s5 + $0x7] ss:$0 sm:$0xff] }
 0x62c   :  { %v713_v28 = vsel %vm712_vm6, %v1248_v16, %v709_v27 }
 0x62d   :  { %v714_v30 = vperm.slane %v713_v28, 0 }
 0x62f   :  { %v718_v34 = vmul.f32 %v714_v30, %v702_v29  ;;  %v717_v36 = vmul.f32 %v714_v30, %v701_v32  ;;  %v716_v37 = vmul.f32 %v714_v30, %v700_v33  ;;  %v715_v41 = vmul.f32 %v714_v30, %v699_v38 }
 0x631   :  { %v727_v39 = vmul.f32 %v1238_v31, %v718_v34  ;;  %v726_v40 = vmul.f32 %v1238_v31, %v717_v36  ;;  %v725_v43 = vmul.f32 %v1238_v31, %v716_v37  ;;  %v724_v47 = vmul.f32 %v1238_v31, %v715_v41 }
 0x633   :  { %v736_v42 = vadd.f32 %v1239_v35, %v727_v39  ;;  %v735_v46 = vadd.f32 %v1239_v35, %v726_v40  ;;  %v734_v49 = vadd.f32 %v1239_v35, %v725_v43  ;;  %v733_v50 = vadd.f32 %v1239_v35, %v724_v47 }
 0x635   :  { %749 = vmatpush.msrb.mxu2 %v736_v42  ;;  %798 = vmatpush.msra.mxu0 %v736_v42 }
 0x637   :  { %750 = vmatpush.msrb.mxu2 %v735_v46  ;;  %799 = vmatpush.msra.mxu0 %v735_v46 }
 0x639   :  { %751 = vmatpush.msrb.mxu2 %v734_v49  ;;  %800 = vmatpush.msra.mxu0 %v734_v49 }
 0x63b   :  { %752 = vmatpush.msrb.mxu2 %v733_v50  ;;  %801 = vmatpush.msra.mxu0 %v733_v50 }
 0x63c   :  { %1184 = vmatmul.msk.f32.vlgmr.msrb.gmra.mxu2 %vm104_vm0, %v1460_v1  ;;  %1190 = vmatmul.msk.f32.vlgmr.msra.gmra.mxu0 %vm104_vm0, %v1393_v21  ;;  %v1186_v21 = vld [vmem:[%s1598_s9 + $0x28] sm:$0xff] }
 0x63d   :  { %779 = vmatpush.msrb.mxu3 %v1186_v21 }
 0x644   :  { %1191 = vmatmul.msk.f32.gmra.mxu0 %vm104_vm0, %v1400_v22  ;;  %v1185_v22 = vld [vmem:[%s1598_s9 + $0x20] sm:$0xff] }
 0x645   :  { %780 = vmatpush.msrb.mxu3 %v1185_v22 }
 0x647   :  { %963 = vmatpush.msra.mxu3 %v933_v4 }
 0x649   :  { %964 = vmatpush.msra.mxu3 %v932_v17 }
 0x64b   :  { %965 = vmatpush.msra.mxu3 %v931_v18 }
 0x64c   :  { %1192 = vmatmul.msk.f32.gmra.mxu0 %vm104_vm0, %v1407_v23  ;;  %v878_v23 = vld [vmem:[#allocation2 + $0xf8] sm:$0xff] }
 0x64d   :  { %908 = vmatpush.msra.mxu2 %v878_v23  ;;  %966 = vmatpush.msra.mxu3 %v930_v19 }
 0x64f   :  { %909 = vmatpush.msra.mxu2 %v877_v63 }
 0x651   :  { %910 = vmatpush.msra.mxu2 %v876_v0 }
 0x653   :  { %911 = vmatpush.msra.mxu2 %v875_v2 }
 0x654   :  { %1193 = vmatmul.msk.f32.gmra.mxu0 %vm104_vm0, %v1414_v24 }
 0x6b9   :  { %v803_v24 = vpop.f32.mrf.mxu0 }
 0x6ba   :  { %v815_v55 = vadd.f32 %v803_v24, %v733_v50 }
 0x6bc   :  { %1195 = vmatmul.msk.f32.vlgmr.msra.gmra.mxu1 %vm104_vm0, %v815_v55 }
 0x6bf   :  { %v754_v56 = vpop.f32.mrf.mxu2 }
 0x6c0   :  { %1189 = vmatmul.msk.f32.vlgmr.msrb.gmra.mxu3 %vm104_vm0, %v754_v56 }
 0x6c1   :  { %v806_v57 = vpop.f32.mrf.mxu0 }
 0x6c2   :  { %v816_v58 = vadd.f32 %v806_v57, %v734_v49 }
 0x6c4   :  { %1196 = vmatmul.msk.f32.gmra.mxu1 %vm104_vm0, %v816_v58 }
 0x6c9   :  { %v809_v59 = vpop.f32.mrf.mxu0 }
 0x6ca   :  { %v817_v60 = vadd.f32 %v809_v59, %v735_v46 }
 0x6cc   :  { %1197 = vmatmul.msk.f32.gmra.mxu1 %vm104_vm0, %v817_v60  ;;  %v1217_v60 = vld [vmem:[%s1598_s9 + $0x58] sm:$0xff] }
 0x6cd   :  { %1111 = vmatpush.msrb.mxu3 %v1217_v60 }
 0x6d1   :  { %v812_v61 = vpop.f32.mrf.mxu0 }
 0x6d2   :  { %v818_v62 = vadd.f32 %v812_v61, %v736_v42  ;;  %v1242_v42 = vld [vmem:[%s1594_s5 + $0x8] ss:$0 sm:$0xff]  ;;  %v1216_v61 = vld [vmem:[%s1598_s9 + $0x50] sm:$0xff] }
 0x6d3   :  { %1112 = vmatpush.msrb.mxu3 %v1216_v61 }
 0x6d4   :  { %1198 = vmatmul.msk.f32.gmra.mxu1 %vm104_vm0, %v818_v62 }
 0x739   :  { %v858_v5 = vpop.f32.mrf.mxu1 }
 0x73a   :  { %v859_v6 = vadd.f32 %v1240_v3, %v858_v5 }
 0x73c   :  { %v870_v7 = vmax.f32 %v859_v6, 0.0 }
 0x73e   :  { %1200 = vmatmul.msk.f32.vlgmr.msra.gmra.mxu2 %vm104_vm0, %v870_v7 }
 0x741   :  { %v861_v8 = vpop.f32.mrf.mxu1 }
 0x742   :  { %v862_v9 = vadd.f32 %v1240_v3, %v861_v8 }
 0x743   :  { %v1551_v38 = vpop.f32.mrf.mxu3 }
 0x744   :  { %v871_v10 = vmax.f32 %v862_v9, 0.0 }
 0x746   :  { %1201 = vmatmul.msk.f32.gmra.mxu2 %vm104_vm0, %v871_v10 }
 0x749   :  { %v864_v11 = vpop.f32.mrf.mxu1 }
 0x74a   :  { %v865_v12 = vadd.f32 %v1240_v3, %v864_v11  ;;  %v1243_v11 = vld [vmem:[%s1595_s6 + $0x2] ss:$0 sm:$0xff] }
 0x74c   :  { %v872_v13 = vmax.f32 %v865_v12, 0.0 }
 0x74e   :  { %1202 = vmatmul.msk.f32.gmra.mxu2 %vm104_vm0, %v872_v13 }
 0x751   :  { %v867_v14 = vpop.f32.mrf.mxu1 }
 0x752   :  { %v868_v15 = vadd.f32 %v1240_v3, %v867_v14  ;;  %v1244_v14 = vld [vmem:[%s1596_s7 + $0x2] ss:$0 sm:$0xff] }
 0x754   :  { %v873_v16 = vmax.f32 %v868_v15, 0.0 }
 0x756   :  { %1203 = vmatmul.msk.f32.gmra.mxu2 %vm104_vm0, %v873_v16 }
 0x7c1   :  { %v913_v25 = vpop.f32.mrf.mxu2 }
 0x7c2   :  { %v914_v27 = vadd.f32 %v1241_v20, %v913_v25 }
 0x7c4   :  { %v925_v28 = vmax.f32 %v914_v27, 0.0 }
 0x7c6   :  { %1205 = vmatmul.msk.f32.vlgmr.msra.gmra.mxu3 %vm104_vm0, %v925_v28 }
 0x7c9   :  { %v916_v29 = vpop.f32.mrf.mxu2 }
 0x7ca   :  { %v917_v30 = vadd.f32 %v1241_v20, %v916_v29 }
 0x7cc   :  { %v926_v31 = vmax.f32 %v917_v30, 0.0 }
 0x7ce   :  { %1206 = vmatmul.msk.f32.gmra.mxu3 %vm104_vm0, %v926_v31  ;;  %v1214_v31 = vld [vmem:[%s1598_s9 + $0x40] sm:$0xff] }
 0x7d1   :  { %v919_v32 = vpop.f32.mrf.mxu2 }
 0x7d2   :  { %v920_v33 = vadd.f32 %v1241_v20, %v919_v32 }
 0x7d4   :  { %v927_v34 = vmax.f32 %v920_v33, 0.0  ;;  %v1236_v33 = vld [vmem:[%s1599_s10] ss:$0 sm:$0xff] }
 0x7d6   :  { %1207 = vmatmul.msk.f32.gmra.mxu3 %vm104_vm0, %v927_v34  ;;  %v451_v34 = vadd.f32 %v1236_v33, %v1495_v54 }
 0x7d9   :  { %v922_v35 = vpop.f32.mrf.mxu2 }
 0x7da   :  { %v923_v36 = vadd.f32 %v1241_v20, %v922_v35 }
 0x7dc   :  { %v928_v37 = vmax.f32 %v923_v36, 0.0 }
 0x7de   :  { %1208 = vmatmul.msk.f32.gmra.mxu3 %vm104_vm0, %v928_v37 }
 0x849   :  { %v968_v39 = vpop.f32.mrf.mxu3 }
 0x84a   :  { %v969_v47 = vadd.f32 %v1242_v42, %v968_v39 }
 0x84c   :  { %v980_v52 = vmax.f32 %v969_v47, 0.0 }
 0x84e   :  { %v1004_v22 = vmul.f32 %v980_v52, %v980_v52 }
 0x851   :  { %v971_v40 = vpop.f32.mrf.mxu3 }
 0x852   :  { %v972_v45 = vadd.f32 %v1242_v42, %v971_v40 }
 0x854   :  { %v981_v50 = vmax.f32 %v972_v45, 0.0 }
 0x856   :  { %v1005_v21 = vmul.f32 %v981_v50, %v981_v50 }
 0x859   :  { %v974_v41 = vpop.f32.mrf.mxu3 }
 0x85a   :  { %v975_v43 = vadd.f32 %v1242_v42, %v974_v41 }
 0x85c   :  { %v982_v48 = vmax.f32 %v975_v43, 0.0 }
 0x85e   :  { %v1006_v53 = vmul.f32 %v982_v48, %v982_v48 }
 0x861   :  { %v977_v44 = vpop.f32.mrf.mxu3 }
 0x862   :  { %v978_v46 = vadd.f32 %v1242_v42, %v977_v44 }
 0x864   :  { %v983_v49 = vmax.f32 %v978_v46, 0.0 }
 0x866   :  { %v1007_v51 = vmul.f32 %v983_v49, %v983_v49  ;;  %996 = vmatpush.msrb.mxu0 %v983_v49 }
 0x868   :  { %997 = vmatpush.msrb.mxu0 %v982_v48  ;;  %1020 = vmatpush.msrb.mxu1 %v1007_v51 }
 0x86a   :  { %998 = vmatpush.msrb.mxu0 %v981_v50  ;;  %1021 = vmatpush.msrb.mxu1 %v1006_v53 }
 0x86c   :  { %999 = vmatpush.msrb.mxu0 %v980_v52  ;;  %1022 = vmatpush.msrb.mxu1 %v1005_v21 }
 0x86d   :  { %1209 = vmatmul.msk.f32.vlgmr.msrb.gmra.mxu0 %vm104_vm0, %v1307_v26 }
 0x86e   :  { %1023 = vmatpush.msrb.mxu1 %v1004_v22 }
 0x86f   :  { %1210 = vmatmul.msk.f32.vlgmr.msrb.gmra.mxu1 %vm104_vm0, %v1307_v26  ;;  %v1215_v26 = vld [vmem:[%s1598_s9 + $0x48] sm:$0xff] }
 0x870   :  { %1113 = vmatpush.msrb.mxu3 %v1215_v26 }
 0x872   :  { %1114 = vmatpush.msrb.mxu3 %v1214_v31 }
 0x8ea   :  { %v1001_v23 = vpop.f32.mrf.mxu0 }
 0x8eb   :  { %v1028_v24 = vmul.f32 0.03125, %v1001_v23 }
 0x8ec   :  { %v1025_v55 = vpop.f32.mrf.mxu1 }
 0x8ed   :  { %v1030_v56 = vmul.f32 %v1028_v24, %v1028_v24  ;;  %v1029_v57 = vmul.f32 0.03125, %v1025_v55  ;;  %v1032_v4 = vperm.slane %v1028_v24, 0 }
 0x8ef   :  { %v1031_v58 = vsub.f32 %v1029_v57, %v1030_v56  ;;  %v1034_v7 = vsub.f32 %v981_v50, %v1032_v4  ;;  %v1035_v8 = vsub.f32 %v982_v48, %v1032_v4  ;;  %v1036_v9 = vsub.f32 %v983_v49, %v1032_v4 }
 0x8f0   :  { %v1033_v12 = vsub.f32 %v980_v52, %v1032_v4 }
 0x8f1   :  { %v1037_v59 = vadd.f32 1e-05, %v1031_v58 }
 0x8f3   :  { %1249 = vrsqrt.f32 %v1037_v59  ;;  %vm1044_vm8 = vweird.f32 %v1037_v59 }
 0x8f9   :  { %v1250_v62 = vpop.eup %1249 }
 0x8fa   :  { %v1039_v63 = vmul.f32 %v1250_v62, %v1037_v59  ;;  %vm1045_vm7 = vweird.f32 %v1250_v62 }
 0x8fb   :  { %vm1046_vm9 = vmor %vm1044_vm8, %vm1045_vm7 }
 0x8fc   :  { %v1040_v0 = vmul.f32 %v1250_v62, %v1039_v63 }
 0x8fe   :  { %v1041_v2 = vmul.f32 0.5, %v1040_v0 }
 0x900   :  { %v1042_v3 = vsub.f32 1.5, %v1041_v2 }
 0x902   :  { %v1043_v5 = vmul.f32 %v1250_v62, %v1042_v3 }
 0x904   :  { %v1047_v6 = vsel %vm1046_vm9, %v1250_v62, %v1043_v5 }
 0x905   :  { %v1048_v10 = vperm.slane %v1047_v6, 0 }
 0x907   :  { %v1052_v13 = vmul.f32 %v1048_v10, %v1036_v9  ;;  %v1051_v15 = vmul.f32 %v1048_v10, %v1035_v8  ;;  %v1050_v16 = vmul.f32 %v1048_v10, %v1034_v7  ;;  %v1049_v19 = vmul.f32 %v1048_v10, %v1033_v12 }
 0x909   :  { %v1061_v17 = vmul.f32 %v1243_v11, %v1052_v13  ;;  %v1060_v18 = vmul.f32 %v1243_v11, %v1051_v15  ;;  %v1059_v25 = vmul.f32 %v1243_v11, %v1050_v16  ;;  %v1058_v28 = vmul.f32 %v1243_v11, %v1049_v19 }
 0x90b   :  { %v1070_v20 = vadd.f32 %v1244_v14, %v1061_v17  ;;  %v1069_v27 = vadd.f32 %v1244_v14, %v1060_v18  ;;  %v1068_v29 = vadd.f32 %v1244_v14, %v1059_v25  ;;  %v1067_v30 = vadd.f32 %v1244_v14, %v1058_v28 }
 0x90d   :  { %1083 = vmatpush.msrb.mxu2 %v1070_v20 }
 0x90f   :  { %1084 = vmatpush.msrb.mxu2 %v1069_v27 }
 0x911   :  { %1085 = vmatpush.msrb.mxu2 %v1068_v29 }
 0x913   :  { %1086 = vmatpush.msrb.mxu2 %v1067_v30 }
 0x914   :  { %1213 = vmatmul.msk.f32.vlgmr.msrb.gmra.mxu2 %vm104_vm0, %v1460_v1  ;;  %v785_v1 = vadd.f32 %v1551_v38, %v451_v34 }
 0x997   :  { %v1088_v32 = vpop.f32.mrf.mxu2 }
 0x998   :  { %1218 = vmatmul.msk.f32.vlgmr.msrb.gmra.mxu3 %vm104_vm0, %v1088_v32 }
 0xa1b   :  { %v1116_v35 = vpop.f32.mrf.mxu3 }
 0xa1c   :  { %v1119_v36 = vadd.f32 %v1116_v35, %v785_v1 }
 0xa1e   :  { %1121 = vst.msk [vmem:[#allocation5] sm:$0x3] %vm1120_vm10, %v1119_v36 }
 0xa1f   :  { %1132 = dma.vmem_to_hbm [thread:$0]  %s1128_s26, 32, %s1130_s28, [#allocation4]  }
 0xa20   :  { %1301 = dma.done.wait [#allocation4], 32  }
 0xa21   :  { %1302 = vsyncadd [#allocation4], 4294967264 }
 0xa22   :  { %1137 = vsyncpa [#allocation3], 1 }
 0xa23   :  { %1138 = vsyncpa [#allocation4], 1 }

</bundles_post_ra>
